<compile_context>
chip_gen: v5e
topology: v5e:2x2
jax: 0.10.0
libtpu: 0.0.40
codegen_flags: <defaults>
</compile_context>

<pallas_src>
import jax
import jax.numpy as jnp
import numpy as np
from jax.experimental import pallas as pl
from jax.experimental.pallas import tpu as pltpu

LANES = 128  # TPU vreg lane width; also the in-kernel chunk width.


def affine_kernel(coef_ref, x_ref, o_ref):
    # coef_ref: (BN, 512) f32 -> four lane-patterned planes of 128 lanes each.
    # x_ref:    (BN, BF)       component-interleaved points (BF = 2 * points_in_block)
    # o_ref:    (BN, BF)
    diag = coef_ref[:, 0 * LANES:1 * LANES]
    p01 = coef_ref[:, 1 * LANES:2 * LANES]
    p10 = coef_ref[:, 2 * LANES:3 * LANES]
    trn = coef_ref[:, 3 * LANES:4 * LANES]

    bf = x_ref.shape[1]
    # Static Python loop over 128-lane columns (BF is a static multiple of 128).
    for c in range(bf // LANES):
        sl = slice(c * LANES, (c + 1) * LANES)
        xc = x_ref[:, sl].astype(jnp.float32)
        # Intra-vreg adjacent-pair partners.  Wrap-around lanes of each roll land
        # only on the parity where p01 / p10 carry zeros, so no masking is needed.
        x_next = pltpu.roll(xc, LANES - 1, axis=1)   # x[l+1] at lane l
        x_prev = pltpu.roll(xc, 1, axis=1)           # x[l-1] at lane l
        y = diag * xc + p01 * x_next + p10 * x_prev + trn
        o_ref[:, sl] = y.astype(o_ref.dtype)


def _pick_block(n, target, quantum):
    """Largest block <= target that is a multiple of `quantum` and divides n.
    Falls back to the full extent n (always legal for BlockSpec)."""
    b = (min(n, target) // quantum) * quantum
    while b >= quantum:
        if n % b == 0:
            return b
        b -= quantum
    return n


def _split_for_megacore(n, f, bn, bf, q_sub):
    """Ensure >= 2 blocks along some 'parallel' grid axis so v7x can shard its
    two TensorCores.  Prefer splitting neurons (coef block stays core-resident)."""
    if n // bn >= 2 or f // bf >= 2:
        return bn, bf
    if bn >= 2 * q_sub:
        cand = _pick_block(n, bn // 2, q_sub)
        if n // cand >= 2:
            return cand, bf
    if bf >= 2 * LANES:
        cand = _pick_block(f, bf // 2, LANES)
        if f // cand >= 2:
            return bn, cand
    return bn, bf


def pack_coefs(As, translation):
    """(N,2,2) + (N,1,2) -> (N, 512) f32 slab of four lane-patterned planes."""
    n = As.shape[0]
    a = As.reshape(n, 4).astype(jnp.float32)            # [A00, A01, A10, A11]
    t = translation.reshape(n, 2).astype(jnp.float32)   # [t0, t1]
    even = (jnp.arange(LANES) % 2 == 0)[None, :]         # (1, 128)
    zeros = jnp.zeros((n, 1), jnp.float32)

    def plane(ev, od):
        return jnp.where(even, ev, od)                   # (N, 128)

    diag = plane(a[:, 0:1], a[:, 3:4])
    p01 = plane(a[:, 1:2], zeros)
    p10 = plane(zeros, a[:, 2:3])
    trn = plane(t[:, 0:1], t[:, 1:2])
    return jnp.concatenate([diag, p01, p10, trn], axis=1)   # (N, 512)


def affine_transform_forward(As, translation, x, *, bn_target=256, bf_target=2048):
    """As: (N, D, D), translation: (N, 1, D), x: (N, C, D) -> (N, C, D).  D must be 2."""
    N, C, D = x.shape
    assert D == 2, "AffineTransform kernel implemented for in_dim == 2"
    F = C * D

    # Pad the flat point axis up to a multiple of 128: keeps every block lane-dense
    # (unmasked stores) regardless of C.  Pad count is even, so component pairs never
    # straddle the real/pad boundary.
    F_pad = ((F + LANES - 1) // LANES) * LANES
    x_flat = x.reshape(N, F)                              # free: collapse last two dims
    if F_pad != F:
        x_flat = jnp.pad(x_flat, ((0, 0), (0, F_pad - F)))

    coefs = pack_coefs(As, translation)                   # (N, 512) f32

    itemsize = jnp.dtype(x.dtype).itemsize
    q_sub = 8 * max(1, 4 // itemsize)                     # 8 for f32, 16 for bf16, 32 for int8
    BN = _pick_block(N, bn_target, q_sub)
    BF = _pick_block(F_pad, bf_target, LANES)
    BN, BF = _split_for_megacore(N, F_pad, BN, BF, q_sub)
    assert BF % LANES == 0 and BF % 2 == 0                # pair-swap correctness invariant

    # Grid: j (points) is INNERMOST so the coefficient block index is unchanged across
    # consecutive steps and Pallas skips re-DMAing the tiny coef slab.
    grid = (N // BN, F_pad // BF)

    # Explicit scoped-VMEM budget: double-buffered in+out tiles + coef block + headroom,
    # floored at the 32 MiB default and capped below v7x's 64 MiB physical VMEM.
    tile_bytes = BN * BF * itemsize
    coef_bytes = BN * 4 * LANES * 4
    vmem_need = 2 * (2 * tile_bytes + coef_bytes) + (4 << 20)
    vmem_limit = int(min(max(vmem_need, 32 << 20), 56 << 20))

    out_flat = pl.pallas_call(
        affine_kernel,
        out_shape=jax.ShapeDtypeStruct((N, F_pad), x.dtype),
        grid_spec=pltpu.PrefetchScalarGridSpec(
            num_scalar_prefetch=0,
            grid=grid,
            in_specs=[
                pl.BlockSpec((BN, 4 * LANES), lambda i, j: (i, 0)),   # coefficient planes
                pl.BlockSpec((BN, BF), lambda i, j: (i, j)),          # points
            ],
            out_specs=pl.BlockSpec((BN, BF), lambda i, j: (i, j)),
        ),
        compiler_params=pltpu.CompilerParams(
            dimension_semantics=("parallel", "parallel"),
            vmem_limit_bytes=vmem_limit),
    )(coefs, x_flat)

    if F_pad != F:
        out_flat = out_flat[:, :F]
    return out_flat.reshape(N, C, D)


def build_As(angles, scalings, shears, uniform_scale=False):
    """Plain-JAX parameter glue mirroring the PyTorch properties (tiny O(N) work)."""
    cos_t, sin_t = jnp.cos(angles), jnp.sin(angles)
    R = jnp.stack([jnp.stack([cos_t, -sin_t], axis=-1),
                   jnp.stack([sin_t, cos_t], axis=-1)], axis=-2)      # (N, 2, 2)
    if uniform_scale:
        scalings = jnp.tile(scalings, (1, 2))
    S = jax.vmap(jnp.diag)(scalings)                                  # (N, 2, 2)
    ones = jnp.ones_like(shears[:, 0])
    Sh = jnp.stack([jnp.stack([ones, shears[:, 0]], axis=-1),
                    jnp.stack([shears[:, 1], ones], axis=-1)], axis=-2)
    return jnp.einsum('nab,nbc,ncd->nad', R, S, Sh)                   # (N, 2, 2)


def _make_inputs(key, n_neurons, n_points, in_dim):
    k_ang, k_scl, k_shr, k_trn, k_x = jax.random.split(key, 5)
    angles = 0.3 * jax.random.normal(k_ang, (n_neurons,), jnp.float32)
    scalings = 1.0 + 0.1 * jax.random.normal(k_scl, (n_neurons, in_dim), jnp.float32)
    shears = 0.1 * jax.random.normal(k_shr, (n_neurons, in_dim), jnp.float32)
    translation = 0.1 * jax.random.normal(k_trn, (n_neurons, 1, in_dim), jnp.float32)
    x = jax.random.normal(k_x, (n_neurons, n_points, in_dim), jnp.float32)
    As = build_As(angles, scalings, shears, uniform_scale=False)
    return As, translation, x


if __name__ == "__main__":
    # TODO(synk): stochastic (training-time) noise path not implemented; eval-mode
    # forward (the default inference semantics) is what the kernel reproduces.
    key = jax.random.PRNGKey(0)
    k1, k2, k3 = jax.random.split(key, 3)

    # --- Test 1: small demo shapes (f32, megacore split on the point axis) ---------
    As, translation, x = _make_inputs(k1, n_neurons=8, n_points=128, in_dim=2)
    out = jax.block_until_ready(affine_transform_forward(As, translation, x))
    ref = jnp.einsum('nab,ncb->nca', As, x) + translation
    np.testing.assert_allclose(np.asarray(out), np.asarray(ref), rtol=1e-5, atol=1e-5)

    # --- Test 2: multi-block grid + non-128-multiple F (exercises padding & the
    # roll wrap-around masking at every block/chunk boundary) ----------------------
    As2, tr2, x2 = _make_inputs(k2, n_neurons=48, n_points=100, in_dim=2)
    out2 = jax.block_until_ready(
        affine_transform_forward(As2, tr2, x2, bn_target=16, bf_target=128))
    ref2 = jnp.einsum('nab,ncb->nca', As2, x2) + tr2
    np.testing.assert_allclose(np.asarray(out2), np.asarray(ref2), rtol=1e-5, atol=1e-5)

    # --- Test 3: bf16 I/O path (compute stays f32 in-register) --------------------
    As3, tr3, x3 = _make_inputs(k3, n_neurons=16, n_points=256, in_dim=2)
    x3_bf16 = x3.astype(jnp.bfloat16)
    out3 = jax.block_until_ready(affine_transform_forward(As3, tr3, x3_bf16))
    ref3 = jnp.einsum('nab,ncb->nca', As3, x3_bf16.astype(jnp.float32)) + tr3
    np.testing.assert_allclose(np.asarray(out3.astype(jnp.float32)),
                               np.asarray(ref3), rtol=2e-2, atol=2e-2)

    print("KERNEL_OK")
</pallas_src>

<mosaic_0001>
module attributes {stable_mosaic.version = 11 : i64} {
  func.func @affine_kernel(%arg0: i32, %arg1: i32, %arg2: memref<8x512xf32, #tpu.memory_space<vmem>>, %arg3: memref<8x128xf32, #tpu.memory_space<vmem>>, %arg4: memref<8x128xf32, #tpu.memory_space<vmem>>) attributes {dimension_semantics = [#tpu.dimension_semantics<parallel>, #tpu.dimension_semantics<parallel>], iteration_bounds = array<i64: 1, 2>, scalar_prefetch = 0 : i64, scratch_operands = 0 : i64, tpu.core_type = #tpu.core_type<tc>, window_params = [{transform_indices = @transform_0, window_bounds = array<i64: 8, 512>}, {transform_indices = @transform_1, window_bounds = array<i64: 8, 128>}, {transform_indices = @transform_2, window_bounds = array<i64: 8, 128>}]} {
    %c0 = arith.constant 0 : index
    %c0_0 = arith.constant 0 : index
    %0 = vector.load %arg2[%c0, %c0_0] : memref<8x512xf32, #tpu.memory_space<vmem>>, vector<8x128xf32>
    %c0_1 = arith.constant 0 : index
    %c128 = arith.constant 128 : index
    %1 = vector.load %arg2[%c0_1, %c128] : memref<8x512xf32, #tpu.memory_space<vmem>>, vector<8x128xf32>
    %c0_2 = arith.constant 0 : index
    %c256 = arith.constant 256 : index
    %2 = vector.load %arg2[%c0_2, %c256] : memref<8x512xf32, #tpu.memory_space<vmem>>, vector<8x128xf32>
    %c0_3 = arith.constant 0 : index
    %c384 = arith.constant 384 : index
    %3 = vector.load %arg2[%c0_3, %c384] : memref<8x512xf32, #tpu.memory_space<vmem>>, vector<8x128xf32>
    %c0_4 = arith.constant 0 : index
    %c0_5 = arith.constant 0 : index
    %4 = vector.load %arg3[%c0_4, %c0_5] : memref<8x128xf32, #tpu.memory_space<vmem>>, vector<8x128xf32>
    %c127_i32 = arith.constant 127 : i32
    %5 = tpu.dynamic_rotate %4 by %c127_i32 dim 1 : vector<8x128xf32>, i32 -> vector<8x128xf32>
    %c1_i32 = arith.constant 1 : i32
    %6 = tpu.dynamic_rotate %4 by %c1_i32 dim 1 : vector<8x128xf32>, i32 -> vector<8x128xf32>
    %7 = arith.mulf %0, %4 : vector<8x128xf32>
    %8 = arith.mulf %1, %5 : vector<8x128xf32>
    %9 = arith.addf %7, %8 : vector<8x128xf32>
    %10 = arith.mulf %2, %6 : vector<8x128xf32>
    %11 = arith.addf %9, %10 : vector<8x128xf32>
    %12 = arith.addf %11, %3 : vector<8x128xf32>
    %c0_6 = arith.constant 0 : index
    %c0_7 = arith.constant 0 : index
    %13 = vector.load %arg4[%c0_6, %c0_7] : memref<8x128xf32, #tpu.memory_space<vmem>>, vector<8x128xf32>
    tpu.vector_store %arg4[%c0_6, %c0_7], %12 {strides = array<i32>} : memref<8x128xf32, #tpu.memory_space<vmem>>, vector<8x128xf32>,
    return
  }
  func.func @transform_0(%arg0: i32, %arg1: i32) -> (i32, i32) {
    %c0_i32 = arith.constant 0 : i32
    %c0_i32_0 = arith.constant 0 : i32
    return %arg0, %c0_i32 : i32, i32
  }
  func.func @transform_1(%arg0: i32, %arg1: i32) -> (i32, i32) {
    %c0_i32 = arith.constant 0 : i32
    return %arg0, %arg1 : i32, i32
  }
  func.func @transform_2(%arg0: i32, %arg1: i32) -> (i32, i32) {
    %c0_i32 = arith.constant 0 : i32
    return %arg0, %arg1 : i32, i32
  }
}

</mosaic_0001>

<bundles_post_ra>
// kernel: tpu_custom_call.1
= control target key start
LH: loop header
LB: loop body
LE: loop exit
PB: predicated region body
PF: predicated region fallthrough
CT: control target
= control target key end

     0   :  { %7 = vsyncpa [#allocation3], 0  ;;  %s737_s0 = inlined_call_operand.hbm [shape: f32[8,512], index: 0, kind: input, shape index: {}]   ;;  %s738_s1 = inlined_call_operand.hbm [shape: f32[8,256], index: 1, kind: input, shape index: {}]   ;;  %s739_s2 = inlined_call_operand.hbm [shape: f32[8,256], index: 2, kind: output, shape index: {}]  }
   0x1   :  { %8 = vsyncpa [#allocation6], 0 }
   0x2   :  { %10 = vsyncpa [#allocation6 + $0x1], 0 }
   0x3   :  { %11 = vsyncpa [#allocation4], 0 }
   0x4   :  { %13 = vsyncpa [#allocation4 + $0x1], 0  ;;  %s588_s9 = smov 0   ;;  %s590_s10 = smov 0  }
   0x5   :  { %s592_s11 = smov 0   ;;  %s594_s12 = smov 0  }
   0x6   :  { %s596_s13 = smov 0   ;;  %s598_s14 = smov 0  }
   0x7 LB: > { %s332_s15 = sadd.s32 4294967295, %s568_s14   ;;  %s333_s16 = sadd.s32 4294967294, %s568_s14   ;;  %s568_s14 = sphi %s598_s14, %s19_s14   ;;  %s564_s13 = sphi %s596_s13, %s751_s13   ;;  %s560_s12 = sphi %s594_s12, %s750_s12   ;;  %s556_s11 = sphi %s592_s11, %s749_s11   ;;  %s552_s10 = sphi %s590_s10, %s748_s10   ;;  %s548_s9 = sphi %s588_s9, %s747_s9  }
   0x8   : > { %p79_p0 = scmp.ne.s32.totalorder %s552_s10, %s548_s9  ;;  %p622_p1 = scmp.eq.s32.totalorder %s332_s15, 0 }
   0x9   : > { %p626_p2 = scmp.eq.s32.totalorder %s332_s15, 1  ;;  %p111_p3 = scmp.eq.s32.totalorder %s333_s16, 1 }
   0xa   : > { %p632_p4 = por %p622_p1, %p79_p0  ;;  %p334_p5 = scmp.ge.s32.totalorder %s568_s14, 1 }
   0xb   : > { %p637_p6 = por %p111_p3, %p79_p0  ;;  %p118_p7 = scmp.lt.s32.totalorder %s568_s14, 3 }
   0xc   : > { %s133_s23 = sshll.u32 %s737_s0, 4  ;;  %p336_p9 = scmp.ge.s32.totalorder %s568_s14, 2  ;;  %s134_s23 = int_to_ptr.hbm [resolvable:$true] %s133_s23 }
   0xd   : > { %p645_p8 = pnand %p334_p5, %p118_p7  ;;  %s570_s25 = smov [#allocation2]  }
   0xe   : > { %s135_s26 = sshll.u32 %s570_s25, 4  ;;  %s28_s27 = sadd.s32 1, %s564_s13  ;;  %s136_s26 = int_to_ptr.vmem [resolvable:$true] %s135_s26 }
   0xf   : > { %p355_p10 = pneg %p645_p8  ;;  %p29_p12 = scmp.ge.s32.totalorder %s28_s27, 2 }
  0x10   : > { %s66_s28 = sadd.s32 1, %s556_s11  ;;  %p73_p13 = scmp.ne.s32.totalorder %s556_s11, %s552_s10 }
  0x11   : > { %p356_p11 = pnand %p355_p10, %p622_p1  ;;  %p74_p0 = scmp.eq.s32.totalorder %s568_s14, 0 }
  0x12   : > { %s753_s27 = smov (%p29_p12, %s28_s27), 0  ;;  %p667_p5 = por %p626_p2, %p73_p13 }
  0x13   : > { %358 = dma.hbm_to_vmem [thread:$0]  (!%p356_p11), %s134_s23, 512, %s136_s26, [#allocation3]  }
  0x14   : > { %p661_p3 = por %p74_p0, %p73_p13  ;;  %s62_s3 = ssub.s32 %s564_s13, %s753_s27 }
  0x15   : > { %p368_p7 = scmp.lt.s32.totalorder %s568_s14, 2  ;;  %p64_p10 = scmp.eq.s32.totalorder %s62_s3, 0 }
  0x16   : > { %s146_s4 = sand.u32 1, %s556_s11   ;;  %s338_s7 = sshll.u32 %s564_s13, 3 }
  0x17   : > { %s337_s5 = sshll.u32 %s146_s4, 3  ;;  %s156_s16 = scalar_lea.hbm %s738_s1, %s338_s7 }
  0x18   : > { %s676_s6 = scalar_select %p64_p10, %s556_s11, %s66_s28  }
  0x19   : > { %s150_s21 = scalar_lea.vmem [#allocation5], %s337_s5  ;;  %s158_s18 = sshll.u32 %s156_s16, 4  ;;  %s159_s18 = int_to_ptr.hbm [resolvable:$true] %s158_s18 }
  0x1a   : > { %s160_s22 = sshll.u32 %s150_s21, 4  ;;  %p360_p2 = pnand %p368_p7, %p661_p3  ;;  %s161_s22 = int_to_ptr.vmem [resolvable:$true] %s160_s22 }
  0x1b   : > { %s147_s23 = scalar_lea.sflag [#allocation6], %s146_s4  ;;  %169 = sbr.rel (%p645_p8) target bundleno = 170 (0xaa), region = 28 }
  0x1c   : > { %362 = dma.hbm_to_vmem [thread:$0]  (!%p360_p2), %s159_s18, 128, %s161_s22, %s147_s23  }
  0x20   : > { %535 = dma.done.wait (%p622_p1), [#allocation3], 512  }
  0x21   : > { %537 = vsyncadd (%p622_p1), [#allocation3], 4294966784  ;;  %s691_s25 = sand.u32 1, %s552_s10  }
  0x22   : > { %s341_s26 = sshll.u32 %s691_s25, 3  ;;  %s177_s28 = scalar_lea.sflag [#allocation6], %s691_s25 }
  0x23   : > { %s180_s29 = scalar_lea.vmem [#allocation5], %s341_s26 }
  0x24   : > { %539 = dma.done.wait (%p632_p4), %s177_s28, 128  }
  0x25   : > { %541 = vsyncadd (%p632_p4), %s177_s28, 4294967168  ;;  %v206_v0 = vld [vmem:[%s180_s29] sm:$0xff]  ;;  %s571_s24 = smov 127   ;;  %s572_s17 = smov 1   ;;  %v204_v6 = vld [vmem:[#allocation2 + $0x10] sm:$0xff] }
  0x26   : > { %207 = vrot.lane.b32.xlu0 %v206_v0, %s571_s24  ;;  %v202_v2 = vld [vmem:[#allocation2] sm:$0xff]  ;;  %v203_v3 = vld [vmem:[#allocation2 + $0x8] sm:$0xff]  ;;  %s344_s3 = sshll.u32 %s560_s12, 3  ;;  %v205_v10 = vld [vmem:[#allocation2 + $0x18] sm:$0xff]  ;;  %s201_s19 = scalar_lea.vmem [#allocation7], %s341_s26 }
  0x27   : > { %v211_v4 = vmul.f32 %v206_v0, %v202_v2  ;;  %s231_s7 = scalar_lea.hbm %s739_s2, %s344_s3  ;;  %s233_s8 = sshll.u32 %s201_s19, 4  ;;  %s234_s8 = int_to_ptr.vmem [resolvable:$true] %s233_s8 }
  0x28   : > { %s235_s15 = sshll.u32 %s231_s7, 4  ;;  %s219_s12 = scalar_lea.sflag [#allocation4], %s691_s25  ;;  %s236_s15 = int_to_ptr.hbm [resolvable:$true] %s235_s15 }
  0x29   : > { %s496_s16 = sshra.s32 %s236_s15, 4  ;;  %s502_s23 = scalar_lea.hbm %s739_s2, 16  ;;  %s497_s16 = int_to_ptr.hbm [resolvable:$true] %s496_s16 }
  0x2a   : > { %s498_s21 = scalar_lea.hbm %s497_s16, 8  ;;  %p503_p11 = scmp.lt.s32.totalorder %s497_s16, %s739_s2 }
  0x2b   : > { %p499_p1 = scmp.ne.s32.totalorder %s497_s16, %s498_s21  ;;  %p504_p12 = scmp.lt.s32.totalorder %s502_s23, %s498_s21 }
  0x2d   : > { %p500_p4 = pnand %p499_p1, %p667_p5  ;;  %p505_p13 = por %p504_p12, %p503_p11 }
  0x2e   : > { %209 = vrot.lane.b32.xlu0 %v206_v0, %s572_s17 }
  0x2f   : > { %p501_p8 = pneg %p500_p4 }
  0x31   : > { %p506_p0 = pnand %p505_p13, %p501_p8 }
  0x98   : > { %v208_v1 = vpop.permute.xlu0 %207 }
  0x99   : > { %v212_v5 = vmul.f32 %v208_v1, %v203_v3 }
  0x9b   : > { %v213_v8 = vadd.f32 %v212_v5, %v211_v4 }
  0xa0   : > { %v210_v7 = vpop.permute.xlu0 %209 }
  0xa1   : > { %v214_v9 = vmul.f32 %v210_v7, %v204_v6 }
  0xa3   : > { %v215_v11 = vadd.f32 %v214_v9, %v213_v8 }
  0xa5   : > { %v216_v12 = vadd.f32 %v215_v11, %v205_v10 }
  0xa7   : > { %217 = vst [vmem:[%s201_s19] sm:$0xff] %v216_v12 }
  0xa8   : > { %509 = shalt.err (!%p506_p0)
}
  0xa9   : > { %353 = dma.vmem_to_hbm [thread:$0]  (%p667_p5), %s234_s8, 128, %s236_s15, %s219_s12  }
  0xaa PF: > { %s247_s25 = sand.u32 1, %s548_s9   ;;  %p364_p3 = pnand %p336_p9, %p637_p6 }
  0xab   : > { %s248_s29 = scalar_lea.sflag [#allocation4], %s247_s25 }
  0xac   : > { %p365_p7 = pneg %p364_p3 }
  0xae   : > { %543 = dma.done.wait (%p365_p7), %s248_s29, 128  }
  0xaf   : > { %545 = vsyncadd (%p365_p7), %s248_s29, 4294967168  ;;  %s19_s14 = sadd.s32 1, %s568_s14   ;;  %s747_s9 = smov %s552_s10 }
  0xb0   : > { %p16_p10 = scmp.ge.s32.totalorder %s19_s14, 4   ;;  %s748_s10 = smov %s556_s11 }
  0xb1   : > { %s749_s11 = smov %s676_s6  ;;  %s750_s12 = smov %s564_s13 }
  0xb2   : > { %s751_s13 = smov %s753_s27  ;;  %18 = sbr.rel (!%p16_p10) target bundleno = 7 (0x7), region = 79 }
  0xb7   :  { %254 = vsyncpa [#allocation3], 1 }
  0xb8   :  { %256 = vsyncpa [#allocation3 + $0x1], 1 }
  0xb9   :  { %257 = vsyncpa [#allocation6], 1 }
  0xba   :  { %259 = vsyncpa [#allocation6 + $0x1], 1 }
  0xbb   :  { %260 = vsyncpa [#allocation4], 1 }
  0xbc   :  { %262 = vsyncpa [#allocation4 + $0x1], 1 }

</bundles_post_ra>
